<compile_context>
chip_gen: v6e
topology: v6e:2x2x1
jax: 0.10.0
libtpu: 0.0.40
codegen_flags: <defaults>
</compile_context>

<pallas_src>
import functools

import jax
import jax.numpy as jnp
from jax.experimental import pallas as pl
from jax.experimental.pallas import tpu as pltpu

LEAKY_SLOPE = 0.01     # F.leaky_relu default negative_slope
BN_EPS = 1e-5          # nn.BatchNorm1d default eps
LANE = 128
BF16_SUBLANE = 16      # bf16 sublane packing; K only needs this, not 128
MAX_BATCH_TILE = 128


def _leaky_relu(x):
    # max(x, slope*x) == leaky_relu for slope < 1 (one vmul + one vmax)
    return jnp.maximum(x, LEAKY_SLOPE * x)


def _round_up(n, m):
    return ((n + m - 1) // m) * m


def _pad2(x, rows, cols):
    return jnp.pad(x, ((0, rows - x.shape[0]), (0, cols - x.shape[1])))


def actor_kernel(x_ref, w1_ref, w23_ref, b_ref, out_ref, stats_ref, *, inv_batch):
    """grid = (2, num_batch_tiles): phase 0 = BN stats, phase 1 = apply + MLP."""
    p = pl.program_id(0)   # phase
    i = pl.program_id(1)   # batch tile index

    # fc1: in-kernel f32->bf16 cast, bf16 MXU inputs, f32 accumulation.
    x = x_ref[...].astype(jnp.bfloat16)
    h = jnp.dot(x, w1_ref[...], preferred_element_type=jnp.float32) + b_ref[0:1, :]
    h = _leaky_relu(h)                                             # (TB, W) f32

    @pl.when((p == 0) & (i == 0))
    def _init_stats():
        stats_ref[...] = jnp.zeros_like(stats_ref)

    @pl.when(p == 0)
    def _accumulate_stats():
        stats_ref[0:1, :] += jnp.sum(h, axis=0, keepdims=True)       # sum
        stats_ref[1:2, :] += jnp.sum(h * h, axis=0, keepdims=True)   # sum of squares

    @pl.when(p == 1)
    def _apply():
        # BatchNorm1d training mode: global batch mean, biased variance,
        # gamma=1, beta=0, fused into one scale/shift.
        # Note: single-pass E[x^2]-E[x]^2 can lose precision for very large
        # activations; fine at this scale (guarded by max(.,0)).
        mean = stats_ref[0:1, :] * inv_batch
        var = jnp.maximum(stats_ref[1:2, :] * inv_batch - mean * mean, 0.0)
        scale = jax.lax.rsqrt(var + BN_EPS)
        shift = -mean * scale
        hn = h * scale + shift

        # fc2 + leaky_relu
        h2 = jnp.dot(hn.astype(jnp.bfloat16), w23_ref[0],
                     preferred_element_type=jnp.float32) + b_ref[1:2, :]
        h2 = _leaky_relu(h2)

        # fc_out + tanh (lane-dense (TB, W) store; sliced to (B, A) outside)
        a = jnp.dot(h2.astype(jnp.bfloat16), w23_ref[1],
                    preferred_element_type=jnp.float32) + b_ref[2:3, :]
        out_ref[...] = jnp.tanh(a)


def prepare_actor_params(params):
    """Pack/pad params for the kernel.

    * K dim of fc1 padded only to the bf16 sublane multiple (16), not 128.
    * H0 / H1 / A all padded to one common lane-dense width W (multiple of 128)
      so w2/w3 stack into one array and biases concatenate into one array.
      (For wildly mismatched hidden sizes, per-layer widths would save bytes.)
    """
    d_in, h0 = params["w1"].shape
    _, h1 = params["w2"].shape
    _, a = params["w3"].shape

    kp = _round_up(d_in, BF16_SUBLANE)
    w = _round_up(max(h0, h1, a), LANE)

    w1 = _pad2(params["w1"], kp, w).astype(jnp.bfloat16)          # (KP, W)
    w2 = _pad2(params["w2"], w, w).astype(jnp.bfloat16)           # (W, W)
    w3 = _pad2(params["w3"], w, w).astype(jnp.bfloat16)           # (W, W)
    w23 = jnp.stack([w2, w3], axis=0)                             # (2, W, W)

    b = jnp.concatenate(
        [_pad2(params["b1"], 1, w),
         _pad2(params["b2"], 1, w),
         _pad2(params["b3"], 1, w)], axis=0).astype(jnp.float32)  # (3, W)

    prepped = {"w1": w1, "w23": w23, "b": b}
    dims = {"d_in": d_in, "kp": kp, "w": w, "a": a}
    return prepped, dims


def actor_forward(state, prepped, dims):
    """state: (B, d_in) f32 (unpadded). prepped/dims from prepare_actor_params."""
    B, d_in = state.shape
    kp, w, a = dims["kp"], dims["w"], dims["a"]
    assert d_in == dims["d_in"]

    if kp != d_in:  # only hit when d_in is not already a multiple of 16
        state = jnp.pad(state, ((0, 0), (0, kp - d_in)))

    tb = B if B <= MAX_BATCH_TILE else MAX_BATCH_TILE
    assert B % tb == 0, "batch must be <=128 or a multiple of 128"
    nbt = B // tb

    kernel = functools.partial(actor_kernel, inv_batch=1.0 / float(B))

    flops = 2 * B * kp * w * 2 + 2 * B * w * w * 2      # fc1 twice, fc2, fc3
    transcendentals = B * w + w                          # tanh + rsqrt
    bytes_accessed = (2 * B * kp * 4            # x read in both phases
                      + kp * w * 2 + 2 * w * w * 2 + 3 * w * 4   # weights/biases
                      + B * w * 4)              # output

    grid_spec = pltpu.PrefetchScalarGridSpec(
        num_scalar_prefetch=0,
        grid=(2, nbt),
        in_specs=[
            pl.BlockSpec((tb, kp), lambda p, i: (i, 0)),      # state tile (f32)
            pl.BlockSpec((kp, w), lambda p, i: (0, 0)),       # w1: VMEM-resident
            pl.BlockSpec((2, w, w), lambda p, i: (0, 0, 0)),  # w2/w3 packed, resident
            pl.BlockSpec((3, w), lambda p, i: (0, 0)),        # biases packed, resident
        ],
        # Phase 0 never writes; keep block index 0 so no garbage is flushed,
        # phase 1 walks the real output tiles.
        out_specs=pl.BlockSpec((tb, w), lambda p, i: (p * i, 0)),
        scratch_shapes=[pltpu.VMEM((2, w), jnp.float32)],     # [sum; sum_sq]
    )

    out_padded = pl.pallas_call(
        kernel,
        out_shape=jax.ShapeDtypeStruct((B, w), jnp.float32),
        grid_spec=grid_spec,
        compiler_params=pltpu.CompilerParams(
            dimension_semantics=("arbitrary", "arbitrary")),
        cost_estimate=pl.CostEstimate(
            flops=int(flops),
            transcendentals=int(transcendentals),
            bytes_accessed=int(bytes_accessed)),
    )(state, prepped["w1"], prepped["w23"], prepped["b"])

    return out_padded[:, :a]


def init_actor_params(key, input_dim, action_dim, hidden_dim):
    """Deterministic init mirroring Actor.__init__/reset_parameters shapes.

    hidden_init uses weight.size()[0] == out_features (as in the original
    code), so fc1/fc2 weights ~ U(-1/sqrt(out_features), 1/sqrt(out_features)).
    Biases keep the default nn.Linear init U(-1/sqrt(in_features), ...).
    Weights stored transposed: (in_features, out_features), f32.
    """
    h0, h1 = hidden_dim
    k = jax.random.split(key, 6)

    lim1 = 1.0 / jnp.sqrt(float(h0))
    lim2 = 1.0 / jnp.sqrt(float(h1))
    blim1 = 1.0 / jnp.sqrt(float(input_dim))
    blim2 = 1.0 / jnp.sqrt(float(h0))
    blim3 = 1.0 / jnp.sqrt(float(h1))

    return {
        "w1": jax.random.uniform(k[0], (input_dim, h0), jnp.float32, -lim1, lim1),
        "b1": jax.random.uniform(k[1], (1, h0), jnp.float32, -blim1, blim1),
        "w2": jax.random.uniform(k[2], (h0, h1), jnp.float32, -lim2, lim2),
        "b2": jax.random.uniform(k[3], (1, h1), jnp.float32, -blim2, blim2),
        "w3": jax.random.uniform(k[4], (h1, action_dim), jnp.float32, -0.003, 0.003),
        "b3": jax.random.uniform(k[5], (1, action_dim), jnp.float32, -blim3, blim3),
    }


def actor_forward_ref(state, params):
    """Pure-JAX reference with matching bf16-matmul / f32-accumulate casts."""
    xb = state.astype(jnp.bfloat16)
    h = jnp.dot(xb, params["w1"].astype(jnp.bfloat16),
                preferred_element_type=jnp.float32) + params["b1"]
    h = _leaky_relu(h)
    mean = jnp.mean(h, axis=0, keepdims=True)
    var = jnp.mean((h - mean) ** 2, axis=0, keepdims=True)
    h = (h - mean) * jax.lax.rsqrt(var + BN_EPS)
    h = jnp.dot(h.astype(jnp.bfloat16), params["w2"].astype(jnp.bfloat16),
                preferred_element_type=jnp.float32) + params["b2"]
    h = _leaky_relu(h)
    a = jnp.dot(h.astype(jnp.bfloat16), params["w3"].astype(jnp.bfloat16),
                preferred_element_type=jnp.float32) + params["b3"]
    return jnp.tanh(a)


if __name__ == "__main__":
    # Batch >= 128 per the perf review (amortizes launch/DMA-setup cost and
    # fills MXU sublanes); data volume is still tiny.
    B, input_dim, action_dim = 256, 16, 8
    hidden_dim = [32, 32]

    key = jax.random.PRNGKey(0)
    pkey, xkey = jax.random.split(key)
    params = init_actor_params(pkey, input_dim, action_dim, hidden_dim)
    state = jax.random.normal(xkey, (B, input_dim), jnp.float32)

    prepped, dims = prepare_actor_params(params)
    out = actor_forward(state, prepped, dims)
    out = jax.block_until_ready(out)

    ref = actor_forward_ref(state, params)
    assert out.shape == (B, action_dim)
    # bf16-matched reference -> only accumulation-order / BN-formula diffs.
    assert jnp.allclose(out, ref, atol=2e-3, rtol=2e-3)

    print("KERNEL_OK")
</pallas_src>

<mosaic_0001>
module attributes {stable_mosaic.version = 11 : i64} {
  func.func @actor_kernel(%arg0: i32, %arg1: i32, %arg2: memref<128x16xf32, #tpu.memory_space<vmem>>, %arg3: memref<16x128xbf16, #tpu.memory_space<vmem>>, %arg4: memref<2x128x128xbf16, #tpu.memory_space<vmem>>, %arg5: memref<3x128xf32, #tpu.memory_space<vmem>>, %arg6: memref<128x128xf32, #tpu.memory_space<vmem>>, %arg7: memref<2x128xf32, #tpu.memory_space<vmem>>) attributes {dimension_semantics = [#tpu.dimension_semantics<arbitrary>, #tpu.dimension_semantics<arbitrary>], iteration_bounds = array<i64: 2, 2>, scalar_prefetch = 0 : i64, scratch_operands = 1 : i64, tpu.core_type = #tpu.core_type<tc>, window_params = [{transform_indices = @transform_0, window_bounds = array<i64: 128, 16>}, {pipeline_mode = #tpu.pipeline_mode<synchronous>, transform_indices = @transform_1, window_bounds = array<i64: 16, 128>}, {pipeline_mode = #tpu.pipeline_mode<synchronous>, transform_indices = @transform_2, window_bounds = array<i64: 2, 128, 128>}, {pipeline_mode = #tpu.pipeline_mode<synchronous>, transform_indices = @transform_3, window_bounds = array<i64: 3, 128>}, {transform_indices = @transform_4, window_bounds = array<i64: 128, 128>}]} {
    %c0 = arith.constant 0 : index
    %c0_0 = arith.constant 0 : index
    %0 = vector.load %arg2[%c0, %c0_0] : memref<128x16xf32, #tpu.memory_space<vmem>>, vector<128x16xf32>
    %1 = arith.truncf %0 : vector<128x16xf32> to vector<128x16xbf16>
    %c0_1 = arith.constant 0 : index
    %c0_2 = arith.constant 0 : index
    %2 = vector.load %arg3[%c0_1, %c0_2] : memref<16x128xbf16, #tpu.memory_space<vmem>>, vector<16x128xbf16>
    %cst = arith.constant dense<0.000000e+00> : vector<128x128xf32>
    %3 = tpu.matmul %1, %2, %cst {dimension_numbers = #tpu.dot_dimension_numbers<[1], [0], [0], [1], [0, 0, 1, 1], [], []>} : vector<128x16xbf16>, vector<16x128xbf16>, vector<128x128xf32> -> vector<128x128xf32>
    %c0_3 = arith.constant 0 : index
    %c0_4 = arith.constant 0 : index
    %4 = vector.load %arg5[%c0_3, %c0_4] : memref<3x128xf32, #tpu.memory_space<vmem>>, vector<1x128xf32>
    %5 = vector.broadcast %4 : vector<1x128xf32> to vector<128x128xf32>
    %6 = arith.addf %3, %5 : vector<128x128xf32>
    %cst_5 = arith.constant 0.00999999977 : f32
    %7 = vector.broadcast %cst_5 : f32 to vector<128x128xf32>
    %8 = arith.mulf %7, %6 : vector<128x128xf32>
    %9 = arith.maximumf %6, %8 : vector<128x128xf32>
    %c0_i32 = arith.constant 0 : i32
    %10 = arith.cmpi eq, %arg0, %c0_i32 : i32
    %c0_i32_6 = arith.constant 0 : i32
    %11 = arith.cmpi eq, %arg1, %c0_i32_6 : i32
    %12 = arith.andi %10, %11 : i1
    %13 = arith.extui %12 : i1 to i32
    %c0_i32_7 = arith.constant 0 : i32
    %14 = arith.cmpi ne, %13, %c0_i32_7 : i32
    scf.if %14 {
      %cst_11 = arith.constant 0.000000e+00 : f32
      %21 = vector.broadcast %cst_11 : f32 to vector<2x128xf32>
      %c0_12 = arith.constant 0 : index
      %c0_13 = arith.constant 0 : index
      %22 = vector.load %arg7[%c0_12, %c0_13] : memref<2x128xf32, #tpu.memory_space<vmem>>, vector<2x128xf32>
      tpu.vector_store %arg7[%c0_12, %c0_13], %21 {strides = array<i32>} : memref<2x128xf32, #tpu.memory_space<vmem>>, vector<2x128xf32>,
    } else {
    }
    %c0_i32_8 = arith.constant 0 : i32
    %15 = arith.cmpi eq, %arg0, %c0_i32_8 : i32
    %16 = arith.extui %15 : i1 to i32
    %c0_i32_9 = arith.constant 0 : i32
    %17 = arith.cmpi ne, %16, %c0_i32_9 : i32
    scf.if %17 {
      %c0_11 = arith.constant 0 : index
      %c0_12 = arith.constant 0 : index
      %21 = vector.load %arg7[%c0_11, %c0_12] : memref<2x128xf32, #tpu.memory_space<vmem>>, vector<1x128xf32>
      %cst_13 = arith.constant dense<0.000000e+00> : vector<128xf32>
      %22 = vector.multi_reduction <add>, %9, %cst_13 [0] : vector<128x128xf32> to vector<128xf32>
      %23 = vector.shape_cast %22 : vector<128xf32> to vector<1x128xf32>
      %24 = arith.addf %21, %23 : vector<1x128xf32>
      %c0_14 = arith.constant 0 : index
      %c0_15 = arith.constant 0 : index
      %25 = vector.load %arg7[%c0_14, %c0_15] : memref<2x128xf32, #tpu.memory_space<vmem>>, vector<1x128xf32>
      tpu.vector_store %arg7[%c0_14, %c0_15], %24 {strides = array<i32>} : memref<2x128xf32, #tpu.memory_space<vmem>>, vector<1x128xf32>,
      %c1 = arith.constant 1 : index
      %c0_16 = arith.constant 0 : index
      %26 = vector.load %arg7[%c1, %c0_16] : memref<2x128xf32, #tpu.memory_space<vmem>>, vector<1x128xf32>
      %27 = arith.mulf %9, %9 : vector<128x128xf32>
      %cst_17 = arith.constant dense<0.000000e+00> : vector<128xf32>
      %28 = vector.multi_reduction <add>, %27, %cst_17 [0] : vector<128x128xf32> to vector<128xf32>
      %29 = vector.shape_cast %28 : vector<128xf32> to vector<1x128xf32>
      %30 = arith.addf %26, %29 : vector<1x128xf32>
      %c1_18 = arith.constant 1 : index
      %c0_19 = arith.constant 0 : index
      %31 = vector.load %arg7[%c1_18, %c0_19] : memref<2x128xf32, #tpu.memory_space<vmem>>, vector<1x128xf32>
      tpu.vector_store %arg7[%c1_18, %c0_19], %30 {strides = array<i32>} : memref<2x128xf32, #tpu.memory_space<vmem>>, vector<1x128xf32>,
    } else {
    }
    %c1_i32 = arith.constant 1 : i32
    %18 = arith.cmpi eq, %arg0, %c1_i32 : i32
    %19 = arith.extui %18 : i1 to i32
    %c0_i32_10 = arith.constant 0 : i32
    %20 = arith.cmpi ne, %19, %c0_i32_10 : i32
    scf.if %20 {
      %c0_11 = arith.constant 0 : index
      %c0_12 = arith.constant 0 : index
      %21 = vector.load %arg7[%c0_11, %c0_12] : memref<2x128xf32, #tpu.memory_space<vmem>>, vector<1x128xf32>
      %cst_13 = arith.constant 3.906250e-03 : f32
      %22 = vector.broadcast %cst_13 : f32 to vector<1x128xf32>
      %23 = arith.mulf %21, %22 : vector<1x128xf32>
      %c1 = arith.constant 1 : index
      %c0_14 = arith.constant 0 : index
      %24 = vector.load %arg7[%c1, %c0_14] : memref<2x128xf32, #tpu.memory_space<vmem>>, vector<1x128xf32>
      %cst_15 = arith.constant 3.906250e-03 : f32
      %25 = vector.broadcast %cst_15 : f32 to vector<1x128xf32>
      %26 = arith.mulf %24, %25 : vector<1x128xf32>
      %27 = arith.mulf %23, %23 : vector<1x128xf32>
      %28 = arith.subf %26, %27 : vector<1x128xf32>
      %cst_16 = arith.constant 0.000000e+00 : f32
      %29 = vector.broadcast %cst_16 : f32 to vector<1x128xf32>
      %30 = arith.maximumf %28, %29 : vector<1x128xf32>
      %cst_17 = arith.constant 9.99999974E-6 : f32
      %31 = vector.broadcast %cst_17 : f32 to vector<1x128xf32>
      %32 = arith.addf %30, %31 : vector<1x128xf32>
      %33 = math.rsqrt %32 : vector<1x128xf32>
      %cst_18 = arith.constant 0.000000e+00 : f32
      %34 = vector.broadcast %cst_18 : f32 to vector<1x128xf32>
      %35 = arith.subf %34, %23 : vector<1x128xf32>
      %36 = arith.mulf %35, %33 : vector<1x128xf32>
      %37 = vector.broadcast %33 : vector<1x128xf32> to vector<128x128xf32>
      %38 = arith.mulf %9, %37 : vector<128x128xf32>
      %39 = vector.broadcast %36 : vector<1x128xf32> to vector<128x128xf32>
      %40 = arith.addf %38, %39 : vector<128x128xf32>
      %41 = arith.truncf %40 : vector<128x128xf32> to vector<128x128xbf16>
      %c0_19 = arith.constant 0 : index
      %c0_20 = arith.constant 0 : index
      %c0_21 = arith.constant 0 : index
      %42 = vector.load %arg4[%c0_19, %c0_20, %c0_21] : memref<2x128x128xbf16, #tpu.memory_space<vmem>>, vector<1x128x128xbf16>
      %43 = vector.shape_cast %42 : vector<1x128x128xbf16> to vector<128x128xbf16>
      %cst_22 = arith.constant dense<0.000000e+00> : vector<128x128xf32>
      %44 = tpu.matmul %41, %43, %cst_22 {dimension_numbers = #tpu.dot_dimension_numbers<[1], [0], [0], [1], [0, 0, 1, 1], [], []>} : vector<128x128xbf16>, vector<128x128xbf16>, vector<128x128xf32> -> vector<128x128xf32>
      %c1_23 = arith.constant 1 : index
      %c0_24 = arith.constant 0 : index
      %45 = vector.load %arg5[%c1_23, %c0_24] : memref<3x128xf32, #tpu.memory_space<vmem>>, vector<1x128xf32>
      %46 = vector.broadcast %45 : vector<1x128xf32> to vector<128x128xf32>
      %47 = arith.addf %44, %46 : vector<128x128xf32>
      %cst_25 = arith.constant 0.00999999977 : f32
      %48 = vector.broadcast %cst_25 : f32 to vector<128x128xf32>
      %49 = arith.mulf %48, %47 : vector<128x128xf32>
      %50 = arith.maximumf %47, %49 : vector<128x128xf32>
      %51 = arith.truncf %50 : vector<128x128xf32> to vector<128x128xbf16>
      %c1_26 = arith.constant 1 : index
      %c0_27 = arith.constant 0 : index
      %c0_28 = arith.constant 0 : index
      %52 = vector.load %arg4[%c1_26, %c0_27, %c0_28] : memref<2x128x128xbf16, #tpu.memory_space<vmem>>, vector<1x128x128xbf16>
      %53 = vector.shape_cast %52 : vector<1x128x128xbf16> to vector<128x128xbf16>
      %cst_29 = arith.constant dense<0.000000e+00> : vector<128x128xf32>
      %54 = tpu.matmul %51, %53, %cst_29 {dimension_numbers = #tpu.dot_dimension_numbers<[1], [0], [0], [1], [0, 0, 1, 1], [], []>} : vector<128x128xbf16>, vector<128x128xbf16>, vector<128x128xf32> -> vector<128x128xf32>
      %c2 = arith.constant 2 : index
      %c0_30 = arith.constant 0 : index
      %55 = vector.load %arg5[%c2, %c0_30] : memref<3x128xf32, #tpu.memory_space<vmem>>, vector<1x128xf32>
      %56 = vector.broadcast %55 : vector<1x128xf32> to vector<128x128xf32>
      %57 = arith.addf %54, %56 : vector<128x128xf32>
      %58 = math.tanh %57 : vector<128x128xf32>
      %c0_31 = arith.constant 0 : index
      %c0_32 = arith.constant 0 : index
      %59 = vector.load %arg6[%c0_31, %c0_32] : memref<128x128xf32, #tpu.memory_space<vmem>>, vector<128x128xf32>
      tpu.vector_store %arg6[%c0_31, %c0_32], %58 {strides = array<i32>} : memref<128x128xf32, #tpu.memory_space<vmem>>, vector<128x128xf32>,
    } else {
    }
    return
  }
  func.func @transform_0(%arg0: i32, %arg1: i32) -> (i32, i32) {
    %c0_i32 = arith.constant 0 : i32
    %c0_i32_0 = arith.constant 0 : i32
    return %arg1, %c0_i32 : i32, i32
  }
  func.func @transform_1(%arg0: i32, %arg1: i32) -> (i32, i32) {
    %c0_i32 = arith.constant 0 : i32
    %c0_i32_0 = arith.constant 0 : i32
    %c0_i32_1 = arith.constant 0 : i32
    return %c0_i32, %c0_i32_0 : i32, i32
  }
  func.func @transform_2(%arg0: i32, %arg1: i32) -> (i32, i32, i32) {
    %c0_i32 = arith.constant 0 : i32
    %c0_i32_0 = arith.constant 0 : i32
    %c0_i32_1 = arith.constant 0 : i32
    %c0_i32_2 = arith.constant 0 : i32
    return %c0_i32, %c0_i32_0, %c0_i32_1 : i32, i32, i32
  }
  func.func @transform_3(%arg0: i32, %arg1: i32) -> (i32, i32) {
    %c0_i32 = arith.constant 0 : i32
    %c0_i32_0 = arith.constant 0 : i32
    %c0_i32_1 = arith.constant 0 : i32
    return %c0_i32, %c0_i32_0 : i32, i32
  }
  func.func @transform_4(%arg0: i32, %arg1: i32) -> (i32, i32) {
    %0 = arith.muli %arg0, %arg1 : i32
    %c0_i32 = arith.constant 0 : i32
    %c0_i32_0 = arith.constant 0 : i32
    return %0, %c0_i32 : i32, i32
  }
}

</mosaic_0001>

<bundles_post_ra>
// kernel: tpu_custom_call.1
= control target key start
LH: loop header
LB: loop body
LE: loop exit
PB: predicated region body
PF: predicated region fallthrough
CT: control target
= control target key end

     0   :  { %9 = vsyncpa [#allocation4], 0  ;;  %s1841_s0 = inlined_call_operand.vmem [shape: f32[256,16], index: 0, kind: input, shape index: {}]   ;;  %s1842_s1 = inlined_call_operand.vmem [shape: bf16[16,128], index: 1, kind: input, shape index: {}]   ;;  %s1843_s2 = inlined_call_operand.vmem [shape: bf16[2,128,128], index: 2, kind: input, shape index: {}]   ;;  %s1844_s3 = inlined_call_operand.vmem [shape: f32[3,128], index: 3, kind: input, shape index: {}]   ;;  %s1845_s4 = inlined_call_operand.hbm [shape: f32[256,128], index: 4, kind: output, shape index: {}]  }
   0x1   :  { %11 = vsyncpa [#allocation4 + $0x1], 0  ;;  %s1469_s15 = smov 0   ;;  %s1471_s16 = smov 0  }
   0x2   :  { %s1473_s17 = smov 0   ;;  %s1475_s18 = smov 0  }
   0x3   :  { %s1477_s19 = smov 0   ;;  %s1479_s20 = smov 0  }
   0x4   :  { %s1481_s21 = smov 0   ;;  %s1483_s22 = smov 0  }
   0x5 LB: > { %s1036_s23 = sadd.s32 4294967295, %s1438_s22   ;;  %s1037_s24 = sadd.s32 4294967294, %s1438_s22   ;;  %s1438_s22 = sphi %s1483_s22, %s17_s22   ;;  %s1434_s21 = sphi %s1481_s21, %s1855_s21   ;;  %s1430_s20 = sphi %s1479_s20, %s1854_s20   ;;  %s1426_s19 = sphi %s1477_s19, %s1853_s19   ;;  %s1422_s18 = sphi %s1475_s18, %s1852_s18   ;;  %s1418_s17 = sphi %s1473_s17, %s1851_s17   ;;  %s1414_s16 = sphi %s1471_s16, %s1850_s16   ;;  %s1410_s15 = sphi %s1469_s15, %s1849_s15  }
   0x6   : > { %s26_s25 = sadd.s32 1, %s1430_s20  ;;  %s29_s26 = sadd.s32 1, %s1434_s21 }
   0x7   : > { %p27_p0 = scmp.ge.s32.totalorder %s26_s25, 2  ;;  %s122_s27 = smul.u32 %s1430_s20, %s1434_s21 }
   0x8   : > { %p137_p1 = scmp.ne.s32.totalorder %s1418_s17, %s1414_s16  ;;  %p138_p2 = scmp.eq.s32.totalorder %s1036_s23, 3 }
   0x9   : > { %s1857_s25 = smov (%p27_p0, %s26_s25), 0  ;;  %s1859_s26 = smov (!%p27_p0, %s29_s26), %s1434_s21 }
   0xa   : > { %p143_p3 = scmp.ne.s32.totalorder %s1414_s16, %s1410_s15  ;;  %p31_p4 = scmp.ge.s32.totalorder %s1859_s26, 2 }
   0xb   : > { %p144_p5 = scmp.eq.s32.totalorder %s1037_s24, 3  ;;  %p1522_p6 = por %p138_p2, %p137_p1 }
   0xc   : > { %p1040_p7 = scmp.ge.s32.totalorder %s1438_s22, 1  ;;  %s1861_s26 = smov (%p31_p4, %s1859_s26), 0 }
   0xd   : > { %p1529_p8 = por %p144_p5, %p143_p3  ;;  %p180_p9 = scmp.lt.s32.totalorder %s1438_s22, 5 }
   0xe   : > { %s123_s30 = smul.u32 %s1861_s26, %s1857_s25  ;;  %s127_s6 = sadd.s32 1, %s1418_s17 }
   0xf   : > { %p181_p10 = pnand %p1040_p7, %p180_p9 }
  0x10   : > { %s124_s5 = ssub.s32 %s122_s27, %s123_s30  ;;  %s203_s8 = sand.u32 (!%p181_p10), 1, %s1414_s16  }
  0x11   : > { %p125_p11 = scmp.eq.s32.totalorder %s124_s5, 0  ;;  %184 = sbr.rel (%p181_p10) target bundleno = 814 (0x32e), region = 36 }
  0x12   : > { %s1546_s11 = sshll.u32 (!%p181_p10), %s203_s8, 7  ;;  %s1042_s12 = sshll.u32 (!%p181_p10), %s1422_s18, 4 }
  0x13   : > { %s1538_s7 = scalar_select %p125_p11, %s1418_s17, %s127_s6  }
  0x14   : > { %p207_p12 = scmp.lt.s32.totalorder (!%p181_p10), %s1042_s12, 31  ;;  %p406_p13 = scmp.eq.s32.totalorder (!%p181_p10), %s1426_s19, 0 }
  0x15   : > { %p407_p0 = scmp.eq.s32.totalorder (!%p181_p10), %s1422_s18, 0  ;;  %s1602_s6 = scalar_lea.vmem (!%p181_p10), [#allocation3], %s1546_s11 }
  0x16   : > { %v1295_v0 = vld [vmem:[%s1842_s1] sm:$0xff]   ;;  %s1863_s12 = smov (!%p207_p12, %s1042_s12), 31  ;;  %vm252_vm0 = vcmask 130048  }
  0x17   : > { %1137 = vmatprep.subr.bf16.mxu0 %v1295_v0  ;;  %1219 = vmatprep.subr.bf16.mxu1 %v1295_v0  ;;  %s1043_s13 = sshll.u32 %s1863_s12, 3  ;;  %p1562_p1 = pnand %p407_p0, %p406_p13  ;;  %v1044_v25 = vld [vmem:[%s1844_s3] ss:$0 sm:$0xff] }
  0x18   : > { %1138 = vmatpush3.bf16.msra.mxu0 %v1295_v0  ;;  %1220 = vmatpush3.bf16.msra.mxu1 %v1295_v0  ;;  %s210_s24 = scalar_lea.vmem %s1841_s0, %s1043_s13 }
  0x19   : > { %v215_v1 = vld [vmem:[%s210_s24] sm:$0xff]  ;;  %v216_v2 = vld [vmem:[%s210_s24 + $0x8] sm:$0xff]  ;;  %v217_v6 = vld [vmem:[%s210_s24 + $0x10] sm:$0xff] }
  0x1a   : > { %v223_v3 = vld [vmem:[%s210_s24 + $0x40] sm:$0xff]  ;;  %v231_v4 = vpack.c.bf16 %v216_v2, %v215_v1  ;;  %v224_v5 = vld [vmem:[%s210_s24 + $0x48] sm:$0xff]  ;;  %v218_v7 = vld [vmem:[%s210_s24 + $0x18] sm:$0xff] }
  0x1b   : > { %v235_v8 = vpack.c.bf16 %v224_v5, %v223_v3  ;;  %v232_v9 = vpack.c.bf16 %v218_v7, %v217_v6  ;;  %v225_v10 = vld [vmem:[%s210_s24 + $0x50] sm:$0xff]  ;;  %v226_v11 = vld [vmem:[%s210_s24 + $0x58] sm:$0xff]  ;;  %v219_v12 = vld [vmem:[%s210_s24 + $0x20] sm:$0xff] }
  0x1c   : > { %1139 = vmatprep.mubr.msk.bf16.mxu0 %vm252_vm0, %v231_v4  ;;  %v236_v13 = vpack.c.bf16 %v226_v11, %v225_v10  ;;  %v220_v14 = vld [vmem:[%s210_s24 + $0x28] sm:$0xff]  ;;  %v227_v15 = vld [vmem:[%s210_s24 + $0x60] sm:$0xff]  ;;  %v221_v19 = vld [vmem:[%s210_s24 + $0x30] sm:$0xff] }
  0x1d   : > { %v228_v16 = vld [vmem:[%s210_s24 + $0x68] sm:$0xff]  ;;  %1147 = vmatprep.mubr.msk.bf16.mxu1 %vm252_vm0, %v235_v8  ;;  %1140 = vmatmul.mubr.msk.bf16.vlgmr.msra.gmra.mxu0 %vm252_vm0, %v232_v9  ;;  %v233_v17 = vpack.c.bf16 %v220_v14, %v219_v12  ;;  %v222_v20 = vld [vmem:[%s210_s24 + $0x38] sm:$0xff]  ;;  %v229_v21 = vld [vmem:[%s210_s24 + $0x70] sm:$0xff] }
  0x1e   : > { %v237_v18 = vpack.c.bf16 %v228_v16, %v227_v15  ;;  %1148 = vmatmul.mubr.msk.bf16.vlgmr.msra.gmra.mxu1 %vm252_vm0, %v236_v13  ;;  %v230_v22 = vld [vmem:[%s210_s24 + $0x78] sm:$0xff]  ;;  %v234_v23 = vpack.c.bf16 %v222_v20, %v221_v19 }
  0x1f   : > { %1143 = vmatprep.mubr.msk.bf16.mxu0 %vm252_vm0, %v233_v17  ;;  %v238_v24 = vpack.c.bf16 %v230_v22, %v229_v21 }
  0x20   : > { %1151 = vmatprep.mubr.msk.bf16.mxu1 %vm252_vm0, %v237_v18 }
  0x25   : > { %1144 = vmatmul.mubr.msk.bf16.gmra.mxu0 %vm252_vm0, %v234_v23 }
  0x26   : > { %1152 = vmatmul.mubr.msk.bf16.gmra.mxu1 %vm252_vm0, %v238_v24 }
  0xdd   : > { %v1141_v26 = vpop.f32.mrf.mxu0 }
  0xde   : > { %v320_v27 = vadd.f32 %v1141_v26, %v1044_v25  ;;  %v1149_v28 = vpop.f32.mrf.mxu1 }
  0xdf   : > { %v352_v29 = vadd.f32 %v1149_v28, %v1044_v25  ;;  %v311_v30 = vpop.f32.mrf.mxu0 }
  0xe0   : > { %v376_v31 = vmul.f32 0.01, %v320_v27  ;;  %v312_v32 = vadd.f32 %v1044_v25, %v311_v30  ;;  %v343_v33 = vpop.f32.mrf.mxu1 }
  0xe1   : > { %v384_v34 = vmul.f32 0.01, %v352_v29  ;;  %v344_v35 = vadd.f32 %v1044_v25, %v343_v33  ;;  %v1142_v36 = vpop.f32.mrf.mxu0 }
  0xe2   : > { %v1569_v37 = vmax.f32 %v320_v27, %v376_v31  ;;  %v374_v38 = vmul.f32 0.01, %v312_v32  ;;  %v323_v39 = vadd.f32 %v1142_v36, %v1044_v25  ;;  %v1150_v40 = vpop.f32.mrf.mxu1 }
  0xe3   : > { %v1571_v41 = vmax.f32 %v352_v29, %v384_v34  ;;  %v382_v42 = vmul.f32 0.01, %v344_v35  ;;  %v355_v43 = vadd.f32 %v1150_v40, %v1044_v25  ;;  %v314_v44 = vpop.f32.mrf.mxu0 }
  0xe4   : > { %v1573_v45 = vmax.f32 %v312_v32, %v374_v38  ;;  %v377_v46 = vmul.f32 0.01, %v323_v39  ;;  %v315_v47 = vadd.f32 %v1044_v25, %v314_v44  ;;  %v346_v48 = vpop.f32.mrf.mxu1 }
  0xe5   : > { %v1575_v49 = vmax.f32 %v344_v35, %v382_v42  ;;  %v385_v50 = vmul.f32 0.01, %v355_v43  ;;  %v347_v51 = vadd.f32 %v1044_v25, %v346_v48  ;;  %v1145_v52 = vpop.f32.mrf.mxu0 }
  0xe6   : > { %v1577_v53 = vmax.f32 %v323_v39, %v377_v46  ;;  %v375_v54 = vmul.f32 0.01, %v315_v47  ;;  %v336_v55 = vadd.f32 %v1145_v52, %v1044_v25  ;;  %v1153_v56 = vpop.f32.mrf.mxu1 }
  0xe7   : > { %v1579_v57 = vmax.f32 %v355_v43, %v385_v50  ;;  %v383_v58 = vmul.f32 0.01, %v347_v51  ;;  %v368_v59 = vadd.f32 %v1153_v56, %v1044_v25  ;;  %v327_v60 = vpop.f32.mrf.mxu0 }
  0xe8   : > { %v1581_v61 = vmax.f32 %v315_v47, %v375_v54  ;;  %v380_v62 = vmul.f32 0.01, %v336_v55  ;;  %v328_v63 = vadd.f32 %v1044_v25, %v327_v60  ;;  %v359_v0 = vpop.f32.mrf.mxu1 }
  0xe9   : > { %v1583_v1 = vmax.f32 %v347_v51, %v383_v58  ;;  %v388_v2 = vmul.f32 0.01, %v368_v59  ;;  %v360_v3 = vadd.f32 %v1044_v25, %v359_v0  ;;  %v1146_v4 = vpop.f32.mrf.mxu0 }
  0xea   : > { %v1585_v5 = vmax.f32 %v336_v55, %v380_v62  ;;  %v378_v6 = vmul.f32 0.01, %v328_v63  ;;  %v339_v7 = vadd.f32 %v1146_v4, %v1044_v25  ;;  %v1154_v8 = vpop.f32.mrf.mxu1 }
  0xeb   : > { %v1587_v9 = vmax.f32 %v368_v59, %v388_v2  ;;  %v386_v10 = vmul.f32 0.01, %v360_v3  ;;  %v371_v11 = vadd.f32 %v1154_v8, %v1044_v25  ;;  %v330_v12 = vpop.f32.mrf.mxu0 }
  0xec   : > { %v1589_v13 = vmax.f32 %v328_v63, %v378_v6  ;;  %v381_v14 = vmul.f32 0.01, %v339_v7  ;;  %v331_v15 = vadd.f32 %v1044_v25, %v330_v12  ;;  %v362_v16 = vpop.f32.mrf.mxu1 }
  0xed   : > { %v1591_v17 = vmax.f32 %v360_v3, %v386_v10  ;;  %v389_v18 = vmul.f32 0.01, %v371_v11  ;;  %v363_v19 = vadd.f32 %v1044_v25, %v362_v16  ;;  %411 = sbr.rel (%p1562_p1) target bundleno = 244 (0xf4), region = 40 }
  0xee   : > { %v1593_v20 = vmax.f32 %v339_v7, %v381_v14  ;;  %v379_v21 = vmul.f32 0.01, %v331_v15 }
  0xef   : > { %v1595_v22 = vmax.f32 %v371_v11, %v389_v18  ;;  %v387_v23 = vmul.f32 0.01, %v363_v19 }
  0xf0   : > { %v1597_v24 = vmax.f32 %v331_v15, %v379_v21 }
  0xf1   : > { %v1599_v26 = vmax.f32 %v363_v19, %v387_v23 }
  0xf2   : > { %v1440_v27 = vmov 0.0  }
  0xf3   : > { %412 = vst [vmem:[#allocation2] sm:$0x3] %v1440_v27 }
  0xf4 PF: > { %p1054_p2 = scmp.ne.s32.totalorder %s1426_s19, 0 }
  0xf6   : > { %415 = sbr.rel (%p1054_p2) target bundleno = 298 (0x12a), region = 44 }
  0xfb   : > { %v417_v25 = vadd.f32 %v1581_v61, %v1573_v45  ;;  %v441_v28 = vmul.f32 %v1573_v45, %v1573_v45  ;;  %v442_v29 = vmul.f32 %v1581_v61, %v1581_v61  ;;  %v443_v31 = vmul.f32 %v1569_v37, %v1569_v37 }
  0xfc   : > { %v444_v33 = vmul.f32 %v1577_v53, %v1577_v53  ;;  %v445_v36 = vmul.f32 %v1589_v13, %v1589_v13  ;;  %v446_v40 = vmul.f32 %v1597_v24, %v1597_v24  ;;  %v447_v44 = vmul.f32 %v1585_v5, %v1585_v5 }
  0xfd   : > { %v418_v30 = vadd.f32 %v417_v25, %v1569_v37  ;;  %v457_v34 = vadd.f32 %v442_v29, %v441_v28  ;;  %v448_v48 = vmul.f32 %v1593_v20, %v1593_v20  ;;  %v449_v52 = vmul.f32 %v1575_v49, %v1575_v49 }
  0xfe   : > { %v450_v56 = vmul.f32 %v1583_v1, %v1583_v1  ;;  %v451_v60 = vmul.f32 %v1571_v41, %v1571_v41  ;;  %v452_v0 = vmul.f32 %v1579_v57, %v1579_v57  ;;  %v453_v4 = vmul.f32 %v1591_v17, %v1591_v17 }
  0xff   : > { %v419_v32 = vadd.f32 %v418_v30, %v1577_v53  ;;  %v458_v38 = vadd.f32 %v457_v34, %v443_v31  ;;  %v454_v8 = vmul.f32 %v1599_v26, %v1599_v26  ;;  %v455_v12 = vmul.f32 %v1587_v9, %v1587_v9 }
 0x100   : > { %v456_v16 = vmul.f32 %v1595_v22, %v1595_v22 }
 0x101   : > { %v420_v35 = vadd.f32 %v419_v32, %v1589_v13  ;;  %v459_v42 = vadd.f32 %v458_v38, %v444_v33  ;;  %v416_v33 = vld [vmem:[#allocation2] sm:$0x1] }
 0x103   : > { %v421_v39 = vadd.f32 %v420_v35, %v1597_v24  ;;  %v460_v46 = vadd.f32 %v459_v42, %v445_v36 }
 0x105   : > { %v422_v43 = vadd.f32 %v421_v39, %v1585_v5  ;;  %v461_v50 = vadd.f32 %v460_v46, %v446_v40  ;;  %v440_v39 = vld [vmem:[#allocation2 + $0x1] sm:$0x1] }
 0x107   : > { %v423_v47 = vadd.f32 %v422_v43, %v1593_v20  ;;  %v462_v54 = vadd.f32 %v461_v50, %v447_v44 }
 0x109   : > { %v424_v51 = vadd.f32 %v423_v47, %v1575_v49  ;;  %v463_v58 = vadd.f32 %v462_v54, %v448_v48 }
 0x10b   : > { %v425_v55 = vadd.f32 %v424_v51, %v1583_v1  ;;  %v464_v62 = vadd.f32 %v463_v58, %v449_v52 }
 0x10d   : > { %v426_v59 = vadd.f32 %v425_v55, %v1571_v41  ;;  %v465_v2 = vadd.f32 %v464_v62, %v450_v56 }
 0x10f   : > { %v427_v63 = vadd.f32 %v426_v59, %v1579_v57  ;;  %v466_v6 = vadd.f32 %v465_v2, %v451_v60 }
 0x111   : > { %v428_v3 = vadd.f32 %v427_v63, %v1591_v17  ;;  %v467_v10 = vadd.f32 %v466_v6, %v452_v0 }
 0x113   : > { %v429_v7 = vadd.f32 %v428_v3, %v1599_v26  ;;  %v468_v14 = vadd.f32 %v467_v10, %v453_v4 }
 0x115   : > { %v430_v11 = vadd.f32 %v429_v7, %v1587_v9  ;;  %v469_v18 = vadd.f32 %v468_v14, %v454_v8 }
 0x117   : > { %v431_v15 = vadd.f32 %v430_v11, %v1595_v22  ;;  %v470_v21 = vadd.f32 %v469_v18, %v455_v12 }
 0x119   : > { %v432_v19 = vrot.slane %v431_v15, 4  ;;  %v471_v27 = vadd.f32 %v470_v21, %v456_v16 }
 0x11b   : > { %v433_v23 = vadd.f32 %v432_v19, %v431_v15  ;;  %v472_v28 = vrot.slane %v471_v27, 4 }
 0x11d   : > { %v434_v25 = vrot.slane %v433_v23, 2  ;;  %v473_v30 = vadd.f32 %v472_v28, %v471_v27 }
 0x11f   : > { %v435_v29 = vadd.f32 %v434_v25, %v433_v23  ;;  %v474_v32 = vrot.slane %v473_v30, 2 }
 0x121   : > { %v436_v31 = vrot.slane %v435_v29, 1  ;;  %v475_v35 = vadd.f32 %v474_v32, %v473_v30 }
 0x123   : > { %v437_v34 = vadd.f32 %v436_v31, %v435_v29  ;;  %v476_v38 = vrot.slane %v475_v35, 1 }
 0x125   : > { %v438_v36 = vadd.f32 %v437_v34, %v416_v33  ;;  %v477_v40 = vadd.f32 %v476_v38, %v475_v35 }
 0x127   : > { %439 = vst [vmem:[#allocation2] sm:$0x1] %v438_v36  ;;  %v478_v42 = vadd.f32 %v477_v40, %v440_v39 }
 0x129   : > { %479 = vst [vmem:[#allocation2 + $0x1] sm:$0x1] %v478_v42 }
 0x12a PF: > { %p1055_p3 = scmp.ne.s32.totalorder %s1426_s19, 1 }
 0x12c   : > { %483 = sbr.rel (%p1055_p3) target bundleno = 789 (0x315), region = 48 }
 0x131   : > { %v1296_v43 = vld [vmem:[%s1843_s2 + $0x38] sm:$0xff]   ;;  %v1297_v44 = vld [vmem:[%s1843_s2 + $0x30] sm:$0xff]   ;;  %v1298_v46 = vld [vmem:[%s1843_s2 + $0x28] sm:$0xff]   ;;  %v495_v4 = vlaneseq }
 0x132   : > { %1155 = vmatprep.subr.bf16.mxu0 %v1296_v43  ;;  %v1299_v47 = vld [vmem:[%s1843_s2 + $0x20] sm:$0xff]   ;;  %v1304_v54 = vld [vmem:[%s1843_s2 + $0x78] sm:$0xff]   ;;  %v1305_v55 = vld [vmem:[%s1843_s2 + $0x70] sm:$0xff]  }
 0x133   : > { %1156 = vmatpush3.bf16.msra.mxu0 %v1296_v43  ;;  %v484_v48 = vld [vmem:[#allocation2] sm:$0x1]  ;;  %v486_v50 = vld [vmem:[#allocation2 + $0x1] sm:$0x1]  ;;  %v1300_v56 = vld [vmem:[%s1843_s2 + $0x18] sm:$0xff]   ;;  %1187 = vmatprep.subr.bf16.mxu1 %v1304_v54  ;;  %v496_v7 = vshrl.u32 %v495_v4, 7 }
 0x134   : > { %1157 = vmatprep.subr.bf16.mxu0 %v1297_v44  ;;  %v485_v51 = vmul.f32 0.00390625, %v484_v48  ;;  %v487_v52 = vmul.f32 0.00390625, %v486_v50  ;;  %1188 = vmatpush3.bf16.msra.mxu1 %v1304_v54  ;;  %v1306_v59 = vld [vmem:[%s1843_s2 + $0x68] sm:$0xff]   ;;  %v1301_v63 = vld [vmem:[%s1843_s2 + $0x10] sm:$0xff]   ;;  %v1307_v2 = vld [vmem:[%s1843_s2 + $0x60] sm:$0xff]  }
 0x135   : > { %1189 = vmatprep.subr.bf16.mxu1 %v1305_v55  ;;  %v1302_v3 = vld [vmem:[%s1843_s2 + $0x8] sm:$0xff]   ;;  %v1303_v6 = vld [vmem:[%s1843_s2] sm:$0xff]   ;;  %v497_v10 = vsub.s32 0, %v496_v7 }
 0x136   : > { %v488_v58 = vmul.f32 %v485_v51, %v485_v51  ;;  %v493_v8 = vsub.f32 0.0, %v485_v51 }
 0x137   : > { %1158 = vmatpush3.bf16.msra.mxu0 %v1297_v44 }
 0x138   : > { %1159 = vmatprep.subr.bf16.mxu0 %v1298_v46  ;;  %v489_v60 = vsub.f32 %v487_v52, %v488_v58  ;;  %1190 = vmatpush3.bf16.msra.mxu1 %v1305_v55  ;;  %v1723_v55 = vld [vmem:[%s1844_s3 + $0x1] ss:$0 sm:$0xff] }
 0x139   : > { %1191 = vmatprep.subr.bf16.mxu1 %v1306_v59 }
 0x13a   : > { %v490_v62 = vmax.f32 %v489_v60, 0.0 }
 0x13b   : > { %1160 = vmatpush3.bf16.msra.mxu0 %v1298_v46 }
 0x13c   : > { %1161 = vmatprep.subr.bf16.mxu0 %v1299_v47  ;;  %v491_v0 = vadd.f32 1e-05, %v490_v62  ;;  %1192 = vmatpush3.bf16.msra.mxu1 %v1306_v59 }
 0x13d   : > { %1193 = vmatprep.subr.bf16.mxu1 %v1307_v2 }
 0x13e   : > { %1312 = vrsqrt.f32 %v491_v0 }
 0x13f   : > { %1162 = vmatpush3.bf16.msra.mxu0 %v1299_v47 }
 0x140   : > { %1163 = vmatprep.subr.bf16.mxu0 %v1300_v56  ;;  %1194 = vmatpush3.bf16.msra.mxu1 %v1307_v2 }
 0x143   : > { %1164 = vmatpush3.bf16.msra.mxu0 %v1300_v56 }
 0x144   : > { %1165 = vmatprep.subr.bf16.mxu0 %v1301_v63 }
 0x147   : > { %1166 = vmatpush3.bf16.msra.mxu0 %v1301_v63 }
 0x148   : > { %1167 = vmatprep.subr.bf16.mxu0 %v1302_v3 }
 0x14b   : > { %1168 = vmatpush3.bf16.msra.mxu0 %v1302_v3  ;;  %v1313_v11 = vpop.eup %1312 }
 0x14c   : > { %1169 = vmatprep.subr.bf16.mxu0 %v1303_v6  ;;  %v494_v12 = vmul.f32 %v1313_v11, %v493_v8  ;;  %v498_v14 = vrot.slane %v1313_v11, %v497_v10 }
 0x14e   : > { %v499_v15 = vmul.f32 %v498_v14, %v1573_v45  ;;  %v500_v16 = vmul.f32 %v498_v14, %v1581_v61  ;;  %v518_v18 = vrot.slane %v494_v12, %v497_v10  ;;  %v501_v19 = vmul.f32 %v498_v14, %v1569_v37 }
 0x14f   : > { %1170 = vmatpush3.bf16.msra.mxu0 %v1303_v6  ;;  %v502_v21 = vmul.f32 %v498_v14, %v1577_v53  ;;  %v503_v23 = vmul.f32 %v498_v14, %v1589_v13  ;;  %v504_v27 = vmul.f32 %v498_v14, %v1597_v24  ;;  %v505_v30 = vmul.f32 %v498_v14, %v1585_v5 }
 0x150   : > { %v519_v25 = vadd.f32 %v518_v18, %v499_v15  ;;  %v520_v28 = vadd.f32 %v518_v18, %v500_v16  ;;  %v521_v29 = vadd.f32 %v518_v18, %v501_v19  ;;  %v506_v45 = vmul.f32 %v498_v14, %v1593_v20 }
 0x151   : > { %v522_v31 = vadd.f32 %v518_v18, %v502_v21  ;;  %v523_v32 = vadd.f32 %v518_v18, %v503_v23  ;;  %v524_v33 = vadd.f32 %v518_v18, %v504_v27  ;;  %v507_v34 = vmul.f32 %v498_v14, %v1575_v49 }
 0x152   : > { %v535_v61 = vpack.c.bf16 %v520_v28, %v519_v25  ;;  %v508_v37 = vmul.f32 %v498_v14, %v1583_v1  ;;  %v525_v13 = vadd.f32 %v518_v18, %v505_v30  ;;  %v526_v24 = vadd.f32 %v518_v18, %v506_v45 }
 0x153   : > { %v536_v53 = vpack.c.bf16 %v522_v31, %v521_v29  ;;  %v537_v35 = vpack.c.bf16 %v524_v33, %v523_v32  ;;  %v527_v36 = vadd.f32 %v518_v18, %v507_v34  ;;  %v509_v39 = vmul.f32 %v498_v14, %v1571_v41 }
 0x154   : > { %1171 = vmatprep.mubr.bf16.mxu0 %v535_v61  ;;  %v528_v38 = vadd.f32 %v518_v18, %v508_v37  ;;  %v538_v5 = vpack.c.bf16 %v526_v24, %v525_v13  ;;  %v510_v40 = vmul.f32 %v498_v14, %v1579_v57  ;;  %v511_v42 = vmul.f32 %v498_v14, %v1591_v17  ;;  %v1308_v17 = vld [vmem:[%s1843_s2 + $0x58] sm:$0xff]  }
 0x155   : > { %1172 = vmatmul.mubr.bf16.vlgmr.msra.gmra.mxu0 %v536_v53  ;;  %v512_v49 = vmul.f32 %v498_v14, %v1599_v26  ;;  %v529_v1 = vadd.f32 %v518_v18, %v509_v39  ;;  %v513_v48 = vmul.f32 %v498_v14, %v1587_v9  ;;  %v514_v50 = vmul.f32 %v498_v14, %v1595_v22  ;;  %v1309_v26 = vld [vmem:[%s1843_s2 + $0x50] sm:$0xff]   ;;  %v1310_v9 = vld [vmem:[%s1843_s2 + $0x48] sm:$0xff]   ;;  %v1311_v22 = vld [vmem:[%s1843_s2 + $0x40] sm:$0xff]  }
 0x156   : > { %1175 = vmatprep.mubr.bf16.mxu0 %v537_v35  ;;  %v539_v20 = vpack.c.bf16 %v528_v38, %v527_v36  ;;  %v530_v43 = vadd.f32 %v518_v18, %v510_v40  ;;  %v531_v44 = vadd.f32 %v518_v18, %v511_v42  ;;  %1195 = vmatprep.subr.bf16.mxu1 %v1308_v17 }
 0x157   : > { %v532_v46 = vadd.f32 %v518_v18, %v512_v49  ;;  %v533_v41 = vadd.f32 %v518_v18, %v513_v48  ;;  %v534_v57 = vadd.f32 %v518_v18, %v514_v50  ;;  %1196 = vmatpush3.bf16.msra.mxu1 %v1308_v17 }
 0x158   : > { %v540_v47 = vpack.c.bf16 %v530_v43, %v529_v1  ;;  %1197 = vmatprep.subr.bf16.mxu1 %v1309_v26 }
 0x159   : > { %v541_v51 = vpack.c.bf16 %v532_v46, %v531_v44  ;;  %v542_v52 = vpack.c.bf16 %v534_v57, %v533_v41 }
 0x15b   : > { %1198 = vmatpush3.bf16.msra.mxu1 %v1309_v26 }
 0x15c   : > { %1199 = vmatprep.subr.bf16.mxu1 %v1310_v9 }
 0x15d   : > { %1176 = vmatmul.mubr.bf16.gmra.mxu0 %v538_v5 }
 0x15e   : > { %1179 = vmatprep.mubr.bf16.mxu0 %v539_v20 }
 0x15f   : > { %1200 = vmatpush3.bf16.msra.mxu1 %v1310_v9 }
 0x160   : > { %1201 = vmatprep.subr.bf16.mxu1 %v1311_v22 }
 0x163   : > { %1202 = vmatpush3.bf16.msra.mxu1 %v1311_v22 }
 0x165   : > { %1180 = vmatmul.mubr.bf16.gmra.mxu0 %v540_v47 }
 0x166   : > { %1183 = vmatprep.mubr.bf16.mxu0 %v541_v51 }
 0x16d   : > { %1184 = vmatmul.mubr.bf16.gmra.mxu0 %v542_v52 }
 0x215   : > { %v1173_v54 = vpop.f32.mrf.mxu0 }
 0x216   : > { %v655_v59 = vadd.f32 %v1173_v54, %v1723_v55 }
 0x217   : > { %v646_v56 = vpop.f32.mrf.mxu0 }
 0x218   : > { %v647_v58 = vadd.f32 %v1723_v55, %v646_v56  ;;  %v711_v4 = vmul.f32 0.01, %v655_v59 }
 0x219   : > { %v1174_v60 = vpop.f32.mrf.mxu0 }
 0x21a   : > { %v658_v62 = vadd.f32 %v1174_v60, %v1723_v55  ;;  %v709_v0 = vmul.f32 0.01, %v647_v58  ;;  %v727_v15 = vmax.f32 %v655_v59, %v711_v4 }
 0x21b   : > { %v649_v63 = vpop.f32.mrf.mxu0 }
 0x21c   : > { %v712_v2 = vmul.f32 0.01, %v658_v62  ;;  %v650_v3 = vadd.f32 %v1723_v55, %v649_v63  ;;  %v725_v12 = vmax.f32 %v647_v58, %v709_v0 }
 0x21d   : > { %v1177_v6 = vpop.f32.mrf.mxu0 }
 0x21e   : > { %v710_v7 = vmul.f32 0.01, %v650_v3  ;;  %v728_v8 = vmax.f32 %v658_v62, %v712_v2  ;;  %v671_v16 = vadd.f32 %v1177_v6, %v1723_v55 }
 0x21f   : > { %v662_v10 = vpop.f32.mrf.mxu0 }
 0x220   : > { %v663_v11 = vadd.f32 %v1723_v55, %v662_v10  ;;  %v726_v14 = vmax.f32 %v650_v3, %v710_v7  ;;  %v742_v27 = vpack.c.bf16 %v728_v8, %v727_v15  ;;  %v715_v30 = vmul.f32 0.01, %v671_v16  ;;  %v1744_v3 = vld [vmem:[%s1844_s3 + $0x2] ss:$0 sm:$0xff] }
 0x221   : > { %v1178_v18 = vpop.f32.mrf.mxu0 }
 0x222   : > { %v674_v19 = vadd.f32 %v1178_v18, %v1723_v55  ;;  %v741_v21 = vpack.c.bf16 %v726_v14, %v725_v12  ;;  %v713_v25 = vmul.f32 0.01, %v663_v11  ;;  %v731_v53 = vmax.f32 %v671_v16, %v715_v30 }
 0x223   : > { %v665_v23 = vpop.f32.mrf.mxu0 }
 0x224   : > { %v716_v28 = vmul.f32 0.01, %v674_v19  ;;  %v666_v29 = vadd.f32 %v1723_v55, %v665_v23  ;;  %1203 = vmatprep.mubr.bf16.mxu1 %v741_v21  ;;  %v729_v61 = vmax.f32 %v663_v11, %v713_v25 }
 0x225   : > { %v1181_v31 = vpop.f32.mrf.mxu0  ;;  %1204 = vmatmul.mubr.bf16.vlgmr.msra.gmra.mxu1 %v742_v27 }
 0x226   : > { %v714_v32 = vmul.f32 0.01, %v666_v29  ;;  %v732_v33 = vmax.f32 %v674_v19, %v716_v28  ;;  %v687_v35 = vadd.f32 %v1181_v31, %v1723_v55 }
 0x227   : > { %v678_v45 = vpop.f32.mrf.mxu0 }
 0x228   : > { %v730_v34 = vmax.f32 %v666_v29, %v714_v32  ;;  %v679_v37 = vadd.f32 %v1723_v55, %v678_v45  ;;  %v744_v5 = vpack.c.bf16 %v732_v33, %v731_v53  ;;  %v719_v42 = vmul.f32 0.01, %v687_v35 }
 0x229   : > { %v1182_v13 = vpop.f32.mrf.mxu0 }
 0x22a   : > { %v690_v24 = vadd.f32 %v1182_v13, %v1723_v55  ;;  %v743_v36 = vpack.c.bf16 %v730_v34, %v729_v61  ;;  %v717_v39 = vmul.f32 0.01, %v679_v37  ;;  %v735_v50 = vmax.f32 %v687_v35, %v719_v42 }
 0x22b   : > { %v681_v38 = vpop.f32.mrf.mxu0 }
 0x22c   : > { %v720_v40 = vmul.f32 0.01, %v690_v24  ;;  %v682_v20 = vadd.f32 %v1723_v55, %v681_v38  ;;  %1207 = vmatprep.mubr.bf16.mxu1 %v743_v36  ;;  %v733_v46 = vmax.f32 %v679_v37, %v717_v39 }
 0x22d   : > { %v1185_v49 = vpop.f32.mrf.mxu0  ;;  %1208 = vmatmul.mubr.bf16.gmra.mxu1 %v744_v5 }
 0x22e   : > { %v718_v1 = vmul.f32 0.01, %v682_v20  ;;  %v736_v43 = vmax.f32 %v690_v24, %v720_v40  ;;  %v703_v51 = vadd.f32 %v1185_v49, %v1723_v55 }
 0x22f   : > { %v694_v44 = vpop.f32.mrf.mxu0 }
 0x230   : > { %v734_v47 = vmax.f32 %v682_v20, %v718_v1  ;;  %v695_v48 = vadd.f32 %v1723_v55, %v694_v44  ;;  %v746_v26 = vpack.c.bf16 %v736_v43, %v735_v50  ;;  %v723_v56 = vmul.f32 0.01, %v703_v51 }
 0x231   : > { %v1186_v41 = vpop.f32.mrf.mxu0 }
 0x232   : > { %v706_v57 = vadd.f32 %v1186_v41, %v1723_v55  ;;  %v745_v52 = vpack.c.bf16 %v734_v47, %v733_v46  ;;  %v721_v9 = vmul.f32 0.01, %v695_v48  ;;  %v739_v63 = vmax.f32 %v703_v51, %v723_v56 }
 0x233   : > { %v697_v17 = vpop.f32.mrf.mxu0 }
 0x234   : > { %v724_v22 = vmul.f32 0.01, %v706_v57  ;;  %v698_v54 = vadd.f32 %v1723_v55, %v697_v17  ;;  %1211 = vmatprep.mubr.bf16.mxu1 %v745_v52  ;;  %v737_v60 = vmax.f32 %v695_v48, %v721_v9 }
 0x235   : > { %1212 = vmatmul.mubr.bf16.gmra.mxu1 %v746_v26 }
 0x236   : > { %v722_v58 = vmul.f32 0.01, %v698_v54  ;;  %v740_v59 = vmax.f32 %v706_v57, %v724_v22 }
 0x238   : > { %v738_v62 = vmax.f32 %v698_v54, %v722_v58  ;;  %v748_v2 = vpack.c.bf16 %v740_v59, %v739_v63 }
 0x23a   : > { %v747_v0 = vpack.c.bf16 %v738_v62, %v737_v60 }
 0x23c   : > { %1215 = vmatprep.mubr.bf16.mxu1 %v747_v0 }
 0x23d   : > { %1216 = vmatmul.mubr.bf16.gmra.mxu1 %v748_v2 }
 0x2e5   : > { %v1205_v4 = vpop.f32.mrf.mxu1 }
 0x2e6   : > { %v862_v55 = vadd.f32 %v1205_v4, %v1744_v3 }
 0x2e7   : > { %v853_v6 = vpop.f32.mrf.mxu1 }
 0x2e8   : > { %1314 = vtanh.f32 %v862_v55  ;;  %v854_v7 = vadd.f32 %v1744_v3, %v853_v6 }
 0x2e9   : > { %v1206_v8 = vpop.f32.mrf.mxu1 }
 0x2ea   : > { %1316 = vtanh.f32 %v854_v7  ;;  %v865_v10 = vadd.f32 %v1206_v8, %v1744_v3 }
 0x2eb   : > { %v856_v11 = vpop.f32.mrf.mxu1 }
 0x2ec   : > { %1318 = vtanh.f32 %v865_v10  ;;  %v857_v12 = vadd.f32 %v1744_v3, %v856_v11 }
 0x2ed   : > { %v1209_v14 = vpop.f32.mrf.mxu1 }
 0x2ee   : > { %1320 = vtanh.f32 %v857_v12  ;;  %v878_v15 = vadd.f32 %v1209_v14, %v1744_v3 }
 0x2ef   : > { %v869_v16 = vpop.f32.mrf.mxu1 }
 0x2f0   : > { %1322 = vtanh.f32 %v878_v15  ;;  %v870_v18 = vadd.f32 %v1744_v3, %v869_v16 }
 0x2f1   : > { %v1210_v19 = vpop.f32.mrf.mxu1 }
 0x2f2   : > { %1324 = vtanh.f32 %v870_v18  ;;  %v881_v21 = vadd.f32 %v1210_v19, %v1744_v3 }
 0x2f3   : > { %v872_v23 = vpop.f32.mrf.mxu1 }
 0x2f4   : > { %1326 = vtanh.f32 %v881_v21  ;;  %v873_v27 = vadd.f32 %v1744_v3, %v872_v23 }
 0x2f5   : > { %v1315_v25 = vpop.eup %1314  ;;  %v1213_v28 = vpop.f32.mrf.mxu1 }
 0x2f6   : > { %934 = vst [vmem:[%s1602_s6 + $0x10] sm:$0xff] %v1315_v25  ;;  %1328 = vtanh.f32 %v873_v27  ;;  %v894_v29 = vadd.f32 %v1213_v28, %v1744_v3 }
 0x2f7   : > { %v1317_v30 = vpop.eup %1316  ;;  %v885_v31 = vpop.f32.mrf.mxu1 }
 0x2f8   : > { %932 = vst [vmem:[%s1602_s6] sm:$0xff] %v1317_v30  ;;  %1330 = vtanh.f32 %v894_v29  ;;  %v886_v32 = vadd.f32 %v1744_v3, %v885_v31 }
 0x2f9   : > { %v1319_v33 = vpop.eup %1318  ;;  %v1214_v45 = vpop.f32.mrf.mxu1 }
 0x2fa   : > { %935 = vst [vmem:[%s1602_s6 + $0x18] sm:$0xff] %v1319_v33  ;;  %1332 = vtanh.f32 %v886_v32  ;;  %v897_v61 = vadd.f32 %v1214_v45, %v1744_v3 }
 0x2fb   : > { %v1321_v34 = vpop.eup %1320  ;;  %v888_v37 = vpop.f32.mrf.mxu1 }
 0x2fc   : > { %933 = vst [vmem:[%s1602_s6 + $0x8] sm:$0xff] %v1321_v34  ;;  %1334 = vtanh.f32 %v897_v61  ;;  %v889_v53 = vadd.f32 %v1744_v3, %v888_v37 }
 0x2fd   : > { %v1323_v35 = vpop.eup %1322  ;;  %v1217_v13 = vpop.f32.mrf.mxu1 }
 0x2fe   : > { %938 = vst [vmem:[%s1602_s6 + $0x30] sm:$0xff] %v1323_v35  ;;  %1336 = vtanh.f32 %v889_v53  ;;  %v910_v24 = vadd.f32 %v1217_v13, %v1744_v3 }
 0x2ff   : > { %v1325_v36 = vpop.eup %1324  ;;  %v901_v38 = vpop.f32.mrf.mxu1 }
 0x300   : > { %936 = vst [vmem:[%s1602_s6 + $0x20] sm:$0xff] %v1325_v36  ;;  %1338 = vtanh.f32 %v910_v24  ;;  %v902_v5 = vadd.f32 %v1744_v3, %v901_v38 }
 0x301   : > { %v1327_v39 = vpop.eup %1326  ;;  %v1218_v40 = vpop.f32.mrf.mxu1 }
 0x302   : > { %939 = vst [vmem:[%s1602_s6 + $0x38] sm:$0xff] %v1327_v39  ;;  %1340 = vtanh.f32 %v902_v5  ;;  %v913_v20 = vadd.f32 %v1218_v40, %v1744_v3 }
 0x303   : > { %v1329_v42 = vpop.eup %1328  ;;  %v904_v49 = vpop.f32.mrf.mxu1 }
 0x304   : > { %937 = vst [vmem:[%s1602_s6 + $0x28] sm:$0xff] %v1329_v42  ;;  %1342 = vtanh.f32 %v913_v20  ;;  %v905_v1 = vadd.f32 %v1744_v3, %v904_v49 }
 0x305   : > { %v1331_v43 = vpop.eup %1330 }
 0x306   : > { %942 = vst [vmem:[%s1602_s6 + $0x50] sm:$0xff] %v1331_v43  ;;  %1344 = vtanh.f32 %v905_v1 }
 0x307   : > { %v1333_v44 = vpop.eup %1332 }
 0x308   : > { %940 = vst [vmem:[%s1602_s6 + $0x40] sm:$0xff] %v1333_v44 }
 0x309   : > { %v1335_v46 = vpop.eup %1334 }
 0x30a   : > { %943 = vst [vmem:[%s1602_s6 + $0x58] sm:$0xff] %v1335_v46 }
 0x30b   : > { %v1337_v47 = vpop.eup %1336 }
 0x30c   : > { %941 = vst [vmem:[%s1602_s6 + $0x48] sm:$0xff] %v1337_v47 }
 0x30d   : > { %v1339_v48 = vpop.eup %1338 }
 0x30e   : > { %946 = vst [vmem:[%s1602_s6 + $0x70] sm:$0xff] %v1339_v48 }
 0x30f   : > { %v1341_v50 = vpop.eup %1340 }
 0x310   : > { %944 = vst [vmem:[%s1602_s6 + $0x60] sm:$0xff] %v1341_v50 }
 0x311   : > { %v1343_v51 = vpop.eup %1342 }
 0x312   : > { %947 = vst [vmem:[%s1602_s6 + $0x78] sm:$0xff] %v1343_v51 }
 0x313   : > { %v1345_v41 = vpop.eup %1344 }
 0x314   : > { %945 = vst [vmem:[%s1602_s6 + $0x68] sm:$0xff] %v1345_v41 }
 0x315 PF: > { %s956_s12 = smul.u32 %s1422_s18, %s1426_s19  ;;  %s963_s13 = sshll.u32 %s1602_s6, 4  ;;  %s1781_s13 = int_to_ptr.vmem [resolvable:$true] %s963_s13 }
 0x316   : > { %s1790_s30 = scalar_lea.sflag [#allocation4], %s203_s8  ;;  %s1346_s5 = scalar_lea.vmem %s1781_s13, 2048 }
 0x317   : > { %s1095_s14 = sshll.u32 %s956_s12, 11  ;;  %p1347_p4 = scmp.ne.s32.totalorder %s1781_s13, %s1346_s5 }
 0x318   : > { %s1786_s27 = scalar_lea.hbm %s1845_s4, %s1095_s14  ;;  %s1441_s18 = smov [#allocation3]  }
 0x319   : > { %p1348_p5 = pnand %p1347_p4, %p1522_p6  ;;  %s1350_s19 = sshll.u32 %s1441_s18, 4  ;;  %s1351_s19 = int_to_ptr.vmem [resolvable:$false] %s1350_s19 }
 0x31a   : > { %s1352_s6 = scalar_lea.vmem %s1351_s19, 4096  ;;  %p1353_p9 = scmp.lt.s32.totalorder %s1781_s13, %s1351_s19 }
 0x31b   : > { %p1349_p7 = pneg %p1348_p5  ;;  %p1354_p10 = scmp.lt.s32.totalorder %s1352_s6, %s1346_s5 }
 0x31d   : > { %p1355_p11 = por %p1354_p10, %p1353_p9 }
 0x31f   : > { %p1356_p12 = pnand %p1355_p11, %p1349_p7 }
 0x321   : > { %1359 = shalt.err (!%p1356_p12)
}
 0x322   : > { %s1360_s8 = scalar_lea.hbm %s1786_s27, 2048  ;;  %s1364_s11 = scalar_lea.hbm %s1845_s4, 4096 }
 0x323   : > { %p1361_p13 = scmp.ne.s32.totalorder %s1786_s27, %s1360_s8  ;;  %p1365_p2 = scmp.lt.s32.totalorder %s1786_s27, %s1845_s4 }
 0x324   : > { %p1366_p3 = scmp.lt.s32.totalorder %s1364_s11, %s1360_s8 }
 0x325   : > { %p1362_p0 = pnand %p1361_p13, %p1522_p6 }
 0x326   : > { %p1367_p4 = por %p1366_p3, %p1365_p2 }
 0x327   : > { %p1363_p1 = pneg %p1362_p0 }
 0x329   : > { %p1368_p5 = pnand %p1367_p4, %p1363_p1 }
 0x32b   : > { %1371 = shalt.err (!%p1368_p5)
}
 0x32c   : > { %s1442_s23 = smov 128   ;;  %s1443_s24 = smov 8  }
 0x32d   : > { %1221 = dma.vmem_to_hbm [thread:$0]  (%p1522_p6), %s1781_s13, 2048, %s1786_s27, %s1790_s30, %s1442_s23, %s1442_s23, %s1443_s24  }
 0x32e PF: > { %p1227_p7 = scmp.ge.s32.totalorder %s1438_s22, 2  ;;  %s978_s5 = sand.u32 1, %s1410_s15  }
 0x32f   : > { %s979_s18 = scalar_lea.sflag [#allocation4], %s978_s5 }
 0x330   : > { %p1224_p9 = pnand %p1227_p7, %p1529_p8 }
 0x332   : > { %p1225_p10 = pneg %p1224_p9 }
 0x334   : > { %1405 = dma.done.wait (%p1225_p10), %s979_s18, 2048  }
 0x335   : > { %1407 = vsyncadd (%p1225_p10), %s979_s18, 4294965248  ;;  %s17_s22 = sadd.s32 1, %s1438_s22   ;;  %s1849_s15 = smov %s1414_s16 }
 0x336   : > { %p14_p11 = scmp.ge.s32.totalorder %s17_s22, 6   ;;  %s1850_s16 = smov %s1418_s17 }
 0x337   : > { %s1851_s17 = smov %s1538_s7  ;;  %s1852_s18 = smov %s1430_s20 }
 0x338   : > { %s1853_s19 = smov %s1434_s21  ;;  %s1854_s20 = smov %s1857_s25 }
 0x339   : > { %s1855_s21 = smov %s1861_s26  ;;  %16 = sbr.rel (!%p14_p11) target bundleno = 5 (0x5), region = 84 }
 0x33e   :  { %984 = vsyncpa [#allocation4], 1 }
 0x33f   :  { %986 = vsyncpa [#allocation4 + $0x1], 1 }

</bundles_post_ra>
